<compile_context>
chip_gen: v5e
topology: v5e:2x2
jax: 0.10.0
libtpu: 0.0.40
codegen_flags: <defaults>
</compile_context>

<pallas_src>
import functools

import jax
import jax.numpy as jnp
from jax.experimental import pallas as pl
from jax.experimental.pallas import tpu as pltpu

# -------------------- small synthetic config --------------------
B, S, H, NH, I, V = 2, 8, 32, 4, 64, 128      # batch, seq, hidden, heads, ffn, vocab
DH = H // NH
N_ENC_LAYERS = 2                               # encoder transformer layers
N_GEN_LAYERS = 1                               # generator transformer layers
RLM_DECODER_LAYERS = 1                         # decoder = deepcopy of last encoder layer(s)
RLM_GENERATOR_MLM_WEIGHT = 1.0
RLM_FREEZE_GENERATOR = False
IGNORE_INDEX = -100
MASK_ID = V - 1
NEG_INF = -1e9
VMEM_LIMIT = 32 * 1024 * 1024                  # safe on v5e/v6e (128 MiB) and v7x (64 MiB)


# -------------------- tile helpers --------------------

def _row_tile(m, pref=128):
    """Largest row tile <= pref that divides m (multiple of 8), else m itself."""
    if m <= pref:
        return m
    for t in range(pref, 7, -8):
        if m % t == 0:
            return t
    return m


def _col_tile(n, pref=512):
    """Largest lane tile <= pref that divides n (multiple of 128), else n itself."""
    if n <= pref:
        return n
    for t in range(pref, 127, -128):
        if n % t == 0:
            return t
    return n


def _ln_rows(x, g, b, eps=1e-12):
    mu = jnp.mean(x, axis=-1, keepdims=True)
    var = jnp.mean((x - mu) ** 2, axis=-1, keepdims=True)
    return (x - mu) * jax.lax.rsqrt(var + eps) * g + b


# ==================== Pallas kernels ====================

def _bert_layer_kernel(x_ref, mask_ref, wqkv_ref, bqkv_ref, wo_ref, bo_ref,
                       ln1_g_ref, ln1_b_ref, w1_ref, b1_ref, w2_ref, b2_ref,
                       ln2_g_ref, ln2_b_ref, o_ref, *, num_heads, scale):
    """One fused BERT layer for one batch element.  x:(S,H), mask:(1,S) additive."""
    f32, bf16 = jnp.float32, jnp.bfloat16
    x = x_ref[...]                                              # (S, H) f32
    Sq, Hd = x.shape
    dh = Hd // num_heads
    mask = mask_ref[...]                                        # (1, S)

    # fused QKV projection (bf16 operands, f32 accumulation on the MXU)
    qkv = jnp.dot(x.astype(bf16), wqkv_ref[...].astype(bf16),
                  preferred_element_type=f32) + bqkv_ref[...]   # (S, 3H)

    # per-head attention: heads are contiguous lane slices of the fused QKV output.
    ctx_heads = []
    for h in range(num_heads):
        qh = qkv[:, h * dh:(h + 1) * dh].astype(bf16)
        kh = qkv[:, Hd + h * dh:Hd + (h + 1) * dh].astype(bf16)
        vh = qkv[:, 2 * Hd + h * dh:2 * Hd + (h + 1) * dh].astype(bf16)
        # q @ k^T without an explicit transpose: contract last dims of both operands.
        s = jax.lax.dot_general(qh, kh, (((1,), (1,)), ((), ())),
                                preferred_element_type=f32)     # (S, S)
        s = s * scale + mask
        s = s - jnp.max(s, axis=-1, keepdims=True)
        p = jnp.exp(s)
        p = p * pl.reciprocal(jnp.sum(p, axis=-1, keepdims=True), approx=True)
        ctx_heads.append(jnp.dot(p.astype(bf16), vh, preferred_element_type=f32))
    ctx = jnp.concatenate(ctx_heads, axis=-1)                   # (S, H)

    attn_out = jnp.dot(ctx.astype(bf16), wo_ref[...].astype(bf16),
                       preferred_element_type=f32) + bo_ref[...]
    h1 = _ln_rows(x + attn_out, ln1_g_ref[...], ln1_b_ref[...])  # residual fused into LN

    # HF BERT uses exact (erf) gelu; tanh approximation used here for TPU lowering.
    ffn = jnp.dot(h1.astype(bf16), w1_ref[...].astype(bf16),
                  preferred_element_type=f32) + b1_ref[...]
    ffn = jax.nn.gelu(ffn, approximate=True)
    ffn = jnp.dot(ffn.astype(bf16), w2_ref[...].astype(bf16),
                  preferred_element_type=f32) + b2_ref[...]
    o_ref[...] = _ln_rows(h1 + ffn, ln2_g_ref[...], ln2_b_ref[...])


def bert_layer_fwd(p, x, add_mask):
    """x: [B, S, H] f32; add_mask: [B, 1, S] additive mask."""
    Bq, Sq, Hd = x.shape
    row = lambda v: v.reshape(1, -1)
    weights = [p["qkv_w"], row(p["qkv_b"]), p["o_w"], row(p["o_b"]),
               row(p["attn_ln_g"]), row(p["attn_ln_b"]),
               p["ffn1_w"], row(p["ffn1_b"]), p["ffn2_w"], row(p["ffn2_b"]),
               row(p["ffn_ln_g"]), row(p["ffn_ln_b"])]
    w_specs = [pl.BlockSpec(w.shape, lambda b: (0, 0)) for w in weights]
    return pl.pallas_call(
        functools.partial(_bert_layer_kernel, num_heads=NH, scale=1.0 / (DH ** 0.5)),
        out_shape=jax.ShapeDtypeStruct((Bq, Sq, Hd), jnp.float32),
        grid=(Bq,),
        in_specs=[pl.BlockSpec((None, Sq, Hd), lambda b: (b, 0, 0)),
                  pl.BlockSpec((None, 1, Sq), lambda b: (b, 0, 0))] + w_specs,
        out_specs=pl.BlockSpec((None, Sq, Hd), lambda b: (b, 0, 0)),
        compiler_params=pltpu.CompilerParams(
            dimension_semantics=("parallel",), vmem_limit_bytes=VMEM_LIMIT),
    )(x, add_mask, *weights)


def _layernorm_kernel(x_ref, g_ref, b_ref, o_ref):
    o_ref[...] = _ln_rows(x_ref[...], g_ref[...], b_ref[...])


def layernorm(x, g, b):
    M, Hd = x.shape
    tm = _row_tile(M, 256)
    return pl.pallas_call(
        _layernorm_kernel,
        out_shape=jax.ShapeDtypeStruct((M, Hd), jnp.float32),
        grid=(M // tm,),
        in_specs=[pl.BlockSpec((tm, Hd), lambda i: (i, 0)),
                  pl.BlockSpec((1, Hd), lambda i: (0, 0)),
                  pl.BlockSpec((1, Hd), lambda i: (0, 0))],
        out_specs=pl.BlockSpec((tm, Hd), lambda i: (i, 0)),
        compiler_params=pltpu.CompilerParams(dimension_semantics=("parallel",)),
    )(x, g.reshape(1, Hd), b.reshape(1, Hd))


def _mlm_head_kernel(x_ref, tr_w_ref, tr_b_ref, ln_g_ref, ln_b_ref,
                     dec_w_ref, dec_b_ref, o_ref, h_scratch):
    """Fused MLM head: transform + gelu + LN (cached in VMEM) + vocab-tile projection."""
    f32, bf16 = jnp.float32, jnp.bfloat16

    @pl.when(pl.program_id(1) == 0)
    def _():
        h = jnp.dot(x_ref[...].astype(bf16), tr_w_ref[...].astype(bf16),
                    preferred_element_type=f32) + tr_b_ref[...]
        h = jax.nn.gelu(h, approximate=True)
        h_scratch[...] = _ln_rows(h, ln_g_ref[...], ln_b_ref[...])

    o_ref[...] = jnp.dot(h_scratch[...].astype(bf16), dec_w_ref[...].astype(bf16),
                         preferred_element_type=f32) + dec_b_ref[...]


def mlm_head_fwd(p, hiddens):
    x = hiddens.reshape(-1, H)
    M = x.shape[0]
    tm = _row_tile(M, 128)
    tn = _col_tile(V, 512)
    return pl.pallas_call(
        _mlm_head_kernel,
        out_shape=jax.ShapeDtypeStruct((M, V), jnp.float32),
        grid=(M // tm, V // tn),
        in_specs=[pl.BlockSpec((tm, H), lambda i, j: (i, 0)),
                  pl.BlockSpec((H, H), lambda i, j: (0, 0)),
                  pl.BlockSpec((1, H), lambda i, j: (0, 0)),
                  pl.BlockSpec((1, H), lambda i, j: (0, 0)),
                  pl.BlockSpec((1, H), lambda i, j: (0, 0)),
                  pl.BlockSpec((H, tn), lambda i, j: (0, j)),
                  pl.BlockSpec((1, tn), lambda i, j: (0, j))],
        out_specs=pl.BlockSpec((tm, tn), lambda i, j: (i, j)),
        scratch_shapes=[pltpu.VMEM((tm, H), jnp.float32)],
        compiler_params=pltpu.CompilerParams(
            dimension_semantics=("parallel", "arbitrary"),
            vmem_limit_bytes=VMEM_LIMIT),
    )(x, p["tr_w"], p["tr_b"].reshape(1, H),
      p["ln_g"].reshape(1, H), p["ln_b"].reshape(1, H),
      p["dec_w"], p["dec_b"].reshape(1, V))


def _masked_ce_kernel(logits_ref, labels_ref, sum_ref, cnt_ref):
    """CrossEntropyLoss(reduction='mean', ignore_index<0): running (sum, count)."""
    @pl.when(pl.program_id(0) == 0)
    def _():
        sum_ref[...] = jnp.zeros_like(sum_ref)
        cnt_ref[...] = jnp.zeros_like(cnt_ref)

    logits = logits_ref[...]               # (tm, V)
    labels = labels_ref[...]               # (tm, 1) int32
    N, Vd = logits.shape
    m = jnp.max(logits, axis=-1, keepdims=True)
    lse = jnp.log(jnp.sum(jnp.exp(logits - m), axis=-1, keepdims=True)) + m
    ids = jax.lax.broadcasted_iota(jnp.int32, (N, Vd), 1)
    onehot = (ids == labels).astype(jnp.float32)
    tgt = jnp.sum(logits * onehot, axis=-1, keepdims=True)
    valid = (labels >= 0).astype(jnp.float32)
    sum_ref[...] += jnp.sum((lse - tgt) * valid).reshape(1, 1)
    cnt_ref[...] += jnp.sum(valid).reshape(1, 1)


def masked_cross_entropy(logits, labels):
    M, Vd = logits.shape
    tm = _row_tile(M, 128)
    loss_sum, cnt = pl.pallas_call(
        _masked_ce_kernel,
        out_shape=(jax.ShapeDtypeStruct((1, 1), jnp.float32),
                   jax.ShapeDtypeStruct((1, 1), jnp.float32)),
        grid=(M // tm,),
        in_specs=[pl.BlockSpec((tm, Vd), lambda i: (i, 0)),
                  pl.BlockSpec((tm, 1), lambda i: (i, 0))],
        out_specs=(pl.BlockSpec((1, 1), lambda i: (0, 0)),
                   pl.BlockSpec((1, 1), lambda i: (0, 0))),
        compiler_params=pltpu.CompilerParams(
            dimension_semantics=("arbitrary",), vmem_limit_bytes=VMEM_LIMIT),
    )(logits, labels.reshape(M, 1).astype(jnp.int32))
    return (loss_sum / cnt)[0, 0]   # matches torch CE: NaN if no valid labels


# ==================== parameter init (deterministic, synthetic) ====================

def dense_init(key, din, dout):
    w = jax.random.normal(key, (din, dout), jnp.float32) * 0.02
    b = jnp.zeros((dout,), jnp.float32)
    return w, b


def init_layer(key):
    ks = jax.random.split(key, 6)
    qw, qb = dense_init(ks[0], H, H)
    kw, kb = dense_init(ks[1], H, H)
    vw, vb = dense_init(ks[2], H, H)
    p = {}
    p["qkv_w"] = jnp.concatenate([qw, kw, vw], axis=1)      # fused (H, 3H)
    p["qkv_b"] = jnp.concatenate([qb, kb, vb], axis=0)      # (3H,)
    p["o_w"], p["o_b"] = dense_init(ks[3], H, H)
    p["attn_ln_g"], p["attn_ln_b"] = jnp.ones((H,), jnp.float32), jnp.zeros((H,), jnp.float32)
    p["ffn1_w"], p["ffn1_b"] = dense_init(ks[4], H, I)
    p["ffn2_w"], p["ffn2_b"] = dense_init(ks[5], I, H)
    p["ffn_ln_g"], p["ffn_ln_b"] = jnp.ones((H,), jnp.float32), jnp.zeros((H,), jnp.float32)
    return p


def init_embeddings(key):
    k1, k2, k3 = jax.random.split(key, 3)
    return dict(
        word_emb=jax.random.normal(k1, (V, H), jnp.float32) * 0.02,
        pos_emb=jax.random.normal(k2, (S, H), jnp.float32) * 0.02,
        type_emb=jax.random.normal(k3, (2, H), jnp.float32) * 0.02,
        ln_g=jnp.ones((H,), jnp.float32),
        ln_b=jnp.zeros((H,), jnp.float32),
    )


def init_mlm_head(key):
    k1, k2 = jax.random.split(key)
    tr_w, tr_b = dense_init(k1, H, H)
    dec_w, dec_b = dense_init(k2, H, V)
    return dict(tr_w=tr_w, tr_b=tr_b,
                ln_g=jnp.ones((H,), jnp.float32), ln_b=jnp.zeros((H,), jnp.float32),
                dec_w=dec_w, dec_b=dec_b)


def init_bert_mlm(key, n_layers):
    ks = jax.random.split(key, n_layers + 2)
    return dict(
        emb=init_embeddings(ks[0]),
        layers=[init_layer(ks[1 + i]) for i in range(n_layers)],
        cls=init_mlm_head(ks[-1]),
    )


# ==================== model forward (glue around the kernels) ====================

def additive_mask(attention_mask):
    # HF get_extended_attention_mask: (1 - mask) * min_value, kept as [B,1,S]
    return ((1.0 - attention_mask.astype(jnp.float32)) * NEG_INF)[:, None, :]


def embeddings_fwd(p, input_ids):
    # TODO(synk): embedding gather stays in plain JAX (dynamic gather has no clean Pallas path here).
    Bq, Sq = input_ids.shape
    x = p["word_emb"][input_ids] + p["pos_emb"][None, :Sq, :] + p["type_emb"][0][None, None, :]
    x = layernorm(x.reshape(Bq * Sq, H), p["ln_g"], p["ln_b"]).reshape(Bq, Sq, H)
    return x


def bert_mlm_fwd(params, input_ids, attention_mask, labels):
    x = embeddings_fwd(params["emb"], input_ids)
    add_mask = additive_mask(attention_mask)
    for lp in params["layers"]:
        x = bert_layer_fwd(lp, x, add_mask)
    logits = mlm_head_fwd(params["cls"], x)                    # (B*S, V)
    loss = masked_cross_entropy(logits, labels.reshape(-1))
    return logits, loss, x                                     # x = last hidden states


def replace_tokens(gen_params, inputs, key):
    """ReplaceLM._replace_tokens: generator MLM + Categorical sampling + merge."""
    logits, g_loss, _ = bert_mlm_fwd(
        gen_params, inputs["input_ids"], inputs["attention_mask"], inputs["labels"])
    logits3 = logits.reshape(inputs["input_ids"].shape + (V,))
    # Categorical(logits).sample() == Gumbel-max sampling (glue, not hot path).
    sampled = jax.random.categorical(key, logits3, axis=-1).astype(jnp.int32)
    is_mask = (inputs["labels"] >= 0).astype(jnp.int32)
    sampled_ids = inputs["input_ids"] * (1 - is_mask) + sampled * is_mask
    return sampled_ids, g_loss


def replace_lm_forward(params, model_input, rng):
    k_enc, k_dec = jax.random.split(rng)
    enc = {k[len("enc_"):]: v for k, v in model_input.items() if k.startswith("enc_")}
    dec = {k[len("dec_"):]: v for k, v in model_input.items() if k.startswith("dec_")}
    labels = model_input["labels"]

    enc_sampled, g_mlm_loss = replace_tokens(params["generator"], enc, k_enc)
    dec_sampled, _ = replace_tokens(params["generator"], dec, k_dec)
    if RLM_FREEZE_GENERATOR:
        g_mlm_loss = jnp.float32(0.0)

    is_replaced = (enc_sampled != labels) & (labels >= 0)
    replace_cnt = jnp.sum(is_replaced.astype(jnp.int32))
    total_cnt = jnp.sum((enc["attention_mask"] == 1).astype(jnp.int32))
    replace_ratio = replace_cnt.astype(jnp.float32) / total_cnt.astype(jnp.float32)

    _, encoder_mlm_loss, hidden = bert_mlm_fwd(
        params["encoder"], enc_sampled, enc["attention_mask"], labels)

    cls_hidden = hidden[:, :1]                                     # [B, 1, H]
    dec_embeds = embeddings_fwd(params["encoder"]["emb"], dec_sampled)
    hiddens = jnp.concatenate([cls_hidden, dec_embeds[:, 1:]], axis=1)
    add_mask = additive_mask(enc["attention_mask"])
    for lp in params["decoder"]:
        hiddens = bert_layer_fwd(lp, hiddens, add_mask)
    dec_logits = mlm_head_fwd(params["encoder"]["cls"], hiddens)
    decoder_mlm_loss = masked_cross_entropy(dec_logits, labels.reshape(-1))

    loss = decoder_mlm_loss + encoder_mlm_loss + g_mlm_loss * RLM_GENERATOR_MLM_WEIGHT
    return dict(loss=loss,
                encoder_mlm_loss=encoder_mlm_loss,
                decoder_mlm_loss=decoder_mlm_loss,
                g_mlm_loss=g_mlm_loss,
                replace_ratio=replace_ratio)


# ==================== driver ====================

if __name__ == "__main__":
    root = jax.random.PRNGKey(0)
    k_param, k_data, k_fwd = jax.random.split(root, 3)
    k_enc_p, k_gen_p = jax.random.split(k_param)

    params = dict(
        encoder=init_bert_mlm(k_enc_p, N_ENC_LAYERS),
        generator=init_bert_mlm(k_gen_p, N_GEN_LAYERS),
    )
    # decoder = copy.deepcopy(encoder.bert.encoder.layer[-rlm_decoder_layers:])
    params["decoder"] = jax.tree_util.tree_map(
        lambda a: a, params["encoder"]["layers"][-RLM_DECODER_LAYERS:])

    kd1, kd2, kd3 = jax.random.split(k_data, 3)
    orig_ids = jax.random.randint(kd1, (B, S), 0, V - 1, dtype=jnp.int32)
    attention_mask = jnp.ones((B, S), jnp.int32).at[1, S - 1].set(0)   # one pad token
    pos = jnp.arange(S)[None, :]
    valid = (attention_mask == 1) & (pos > 0)                          # never mask CLS / pad

    enc_mask_pos = jax.random.bernoulli(kd2, 0.35, (B, S)).at[:, 1].set(True) & valid
    dec_mask_pos = jax.random.bernoulli(kd3, 0.50, (B, S)).at[:, 2].set(True) & valid

    enc_input_ids = jnp.where(enc_mask_pos, MASK_ID, orig_ids)
    dec_input_ids = jnp.where(dec_mask_pos, MASK_ID, orig_ids)
    enc_labels = jnp.where(enc_mask_pos, orig_ids, IGNORE_INDEX)
    dec_labels = jnp.where(dec_mask_pos, orig_ids, IGNORE_INDEX)
    labels = enc_labels                                                # model_input['labels']

    model_input = dict(
        enc_input_ids=enc_input_ids, enc_attention_mask=attention_mask, enc_labels=enc_labels,
        dec_input_ids=dec_input_ids, dec_attention_mask=attention_mask, dec_labels=dec_labels,
        labels=labels,
    )

    out = replace_lm_forward(params, model_input, k_fwd)
    out = jax.block_until_ready(out)
    assert bool(jnp.isfinite(out["loss"]))
    assert bool(jnp.isfinite(out["replace_ratio"]))
    print("KERNEL_OK")
</pallas_src>

<mosaic_0001>
module attributes {stable_mosaic.version = 11 : i64} {
  func.func @_layernorm_kernel(%arg0: i32, %arg1: memref<16x32xf32, #tpu.memory_space<vmem>>, %arg2: memref<1x32xf32, #tpu.memory_space<vmem>>, %arg3: memref<1x32xf32, #tpu.memory_space<vmem>>, %arg4: memref<16x32xf32, #tpu.memory_space<vmem>>) attributes {dimension_semantics = [#tpu.dimension_semantics<parallel>], iteration_bounds = array<i64: 1>, scalar_prefetch = 0 : i64, scratch_operands = 0 : i64, tpu.core_type = #tpu.core_type<tc>, window_params = [{transform_indices = @transform_0, window_bounds = array<i64: 16, 32>}, {pipeline_mode = #tpu.pipeline_mode<synchronous>, transform_indices = @transform_1, window_bounds = array<i64: 1, 32>}, {pipeline_mode = #tpu.pipeline_mode<synchronous>, transform_indices = @transform_2, window_bounds = array<i64: 1, 32>}, {transform_indices = @transform_3, window_bounds = array<i64: 16, 32>}]} {
    %c0 = arith.constant 0 : index
    %c0_0 = arith.constant 0 : index
    %0 = vector.load %arg1[%c0, %c0_0] : memref<16x32xf32, #tpu.memory_space<vmem>>, vector<16x32xf32>
    %c0_1 = arith.constant 0 : index
    %c0_2 = arith.constant 0 : index
    %1 = vector.load %arg2[%c0_1, %c0_2] : memref<1x32xf32, #tpu.memory_space<vmem>>, vector<1x32xf32>
    %c0_3 = arith.constant 0 : index
    %c0_4 = arith.constant 0 : index
    %2 = vector.load %arg3[%c0_3, %c0_4] : memref<1x32xf32, #tpu.memory_space<vmem>>, vector<1x32xf32>
    %cst = arith.constant dense<0.000000e+00> : vector<16xf32>
    %3 = vector.multi_reduction <add>, %0, %cst [1] : vector<16x32xf32> to vector<16xf32>
    %4 = vector.shape_cast %3 : vector<16xf32> to vector<16x1xf32>
    %cst_5 = arith.constant 3.200000e+01 : f32
    %5 = vector.broadcast %cst_5 : f32 to vector<16x1xf32>
    %6 = arith.divf %4, %5 : vector<16x1xf32>
    %7 = vector.broadcast %6 : vector<16x1xf32> to vector<16x32xf32>
    %8 = arith.subf %0, %7 : vector<16x32xf32>
    %9 = arith.mulf %8, %8 : vector<16x32xf32>
    %cst_6 = arith.constant dense<0.000000e+00> : vector<16xf32>
    %10 = vector.multi_reduction <add>, %9, %cst_6 [1] : vector<16x32xf32> to vector<16xf32>
    %11 = vector.shape_cast %10 : vector<16xf32> to vector<16x1xf32>
    %cst_7 = arith.constant 3.200000e+01 : f32
    %12 = vector.broadcast %cst_7 : f32 to vector<16x1xf32>
    %13 = arith.divf %11, %12 : vector<16x1xf32>
    %14 = vector.broadcast %6 : vector<16x1xf32> to vector<16x32xf32>
    %15 = arith.subf %0, %14 : vector<16x32xf32>
    %cst_8 = arith.constant 9.99999996E-13 : f32
    %16 = vector.broadcast %cst_8 : f32 to vector<16x1xf32>
    %17 = arith.addf %13, %16 : vector<16x1xf32>
    %18 = math.rsqrt %17 : vector<16x1xf32>
    %19 = vector.broadcast %18 : vector<16x1xf32> to vector<16x32xf32>
    %20 = arith.mulf %15, %19 : vector<16x32xf32>
    %21 = vector.broadcast %1 : vector<1x32xf32> to vector<16x32xf32>
    %22 = arith.mulf %20, %21 : vector<16x32xf32>
    %23 = vector.broadcast %2 : vector<1x32xf32> to vector<16x32xf32>
    %24 = arith.addf %22, %23 : vector<16x32xf32>
    %c0_9 = arith.constant 0 : index
    %c0_10 = arith.constant 0 : index
    %25 = vector.load %arg4[%c0_9, %c0_10] : memref<16x32xf32, #tpu.memory_space<vmem>>, vector<16x32xf32>
    tpu.vector_store %arg4[%c0_9, %c0_10], %24 {strides = array<i32>} : memref<16x32xf32, #tpu.memory_space<vmem>>, vector<16x32xf32>,
    return
  }
  func.func @transform_0(%arg0: i32) -> (i32, i32) {
    %c0_i32 = arith.constant 0 : i32
    %c0_i32_0 = arith.constant 0 : i32
    return %arg0, %c0_i32 : i32, i32
  }
  func.func @transform_1(%arg0: i32) -> (i32, i32) {
    %c0_i32 = arith.constant 0 : i32
    %c0_i32_0 = arith.constant 0 : i32
    %c0_i32_1 = arith.constant 0 : i32
    return %c0_i32, %c0_i32_0 : i32, i32
  }
  func.func @transform_2(%arg0: i32) -> (i32, i32) {
    %c0_i32 = arith.constant 0 : i32
    %c0_i32_0 = arith.constant 0 : i32
    %c0_i32_1 = arith.constant 0 : i32
    return %c0_i32, %c0_i32_0 : i32, i32
  }
  func.func @transform_3(%arg0: i32) -> (i32, i32) {
    %c0_i32 = arith.constant 0 : i32
    %c0_i32_0 = arith.constant 0 : i32
    return %arg0, %c0_i32 : i32, i32
  }
}

</mosaic_0001>

<bundles_post_ra>
// kernel: tpu_custom_call.1
= control target key start
LH: loop header
LB: loop body
LE: loop exit
PB: predicated region body
PF: predicated region fallthrough
CT: control target
= control target key end

     0   :  { %8 = vsyncpa [#allocation3], 0  ;;  %s275_s0 = inlined_call_operand.hbm [shape: f32[16,32], index: 0, kind: input, shape index: {}]   ;;  %s276_s1 = inlined_call_operand.hbm [shape: f32[1,32], index: 1, kind: input, shape index: {}]   ;;  %s277_s2 = inlined_call_operand.vmem [shape: f32[1,32], index: 2, kind: input, shape index: {}]   ;;  %s278_s3 = inlined_call_operand.hbm [shape: f32[16,32], index: 3, kind: output, shape index: {}]  }
   0x1   :  { %9 = vsyncpa [#allocation6], 0 }
   0x2   :  { %10 = vsyncpa [#allocation4], 0  ;;  %s15_s14 = sshll.u32 %s275_s0, 4  ;;  %s225_s15 = smov [#allocation2]   ;;  %s16_s14 = int_to_ptr.hbm [resolvable:$true] %s15_s14 }
   0x3   :  { %s17_s16 = sshll.u32 %s225_s15, 4  ;;  %s29_s19 = sshll.u32 %s276_s1, 4  ;;  %s18_s16 = int_to_ptr.vmem [resolvable:$true] %s17_s16  ;;  %s30_s19 = int_to_ptr.hbm [resolvable:$true] %s29_s19 }
   0x4   :  { %s226_s20 = smov 128   ;;  %s227_s21 = smov 8  }
   0x5   :  { %23 = dma.hbm_to_vmem [thread:$0]  %s16_s14, 256, %s18_s16, [#allocation3], %s226_s20, %s226_s20, %s227_s21  }
   0x6   :  { %s228_s22 = smov [#allocation5]  }
   0x7   :  { %s31_s23 = sshll.u32 %s228_s22, 4  ;;  %s32_s23 = int_to_ptr.vmem [resolvable:$true] %s31_s23 }
   0x8   :  { %34 = dma.hbm_to_vmem [thread:$0]  %s30_s19, 16, %s32_s23, [#allocation6]  }
   0x9   :  { %219 = dma.done.wait [#allocation3], 256  }
   0xa   :  { %220 = vsyncadd [#allocation3], 4294967040 }
   0xb   :  { %221 = dma.done.wait [#allocation6], 16  }
   0xc   :  { %222 = vsyncadd [#allocation6], 4294967280  ;;  %vm49_vm0 = vcmask 261120   ;;  %v45_v0 = vld [vmem:[#allocation2] sm:$0xff]  ;;  %v46_v2 = vld [vmem:[#allocation2 + $0x8] sm:$0xff]  ;;  %v229_v4 = vmov 32.0  }
   0xd   :  { %v50_v1 = vsel %vm49_vm0, %v45_v0, 0.0  ;;  %v53_v3 = vsel %vm49_vm0, %v46_v2, 0.0  ;;  %141 = vrcp.f32 %v229_v4  ;;  %v139_v35 = vld [vmem:[#allocation5] ss:$0 sm:$0xff]  ;;  %v140_v39 = vld [vmem:[%s277_s2] ss:$0 sm:$0xff] }
   0xe   :  { %51 = vadd.xlane.f32.xlu0 %v50_v1  ;;  %s230_s24 = smov [#allocation7]   ;;  %s119_s28 = sshll.u32 %s278_s3, 4  ;;  %s120_s28 = int_to_ptr.hbm [resolvable:$true] %s119_s28 }
   0xf   :  { %s117_s25 = sshll.u32 %s230_s24, 4  ;;  %s118_s25 = int_to_ptr.vmem [resolvable:$true] %s117_s25 }
  0x13   :  { %v142_v5 = vpop.eup %141 }
  0x14   :  { %v57_v6 = vmul.f32 32.0, %v142_v5  ;;  %vm61_vm1 = vweird.f32 %v142_v5 }
  0x16   :  { %54 = vadd.xlane.f32.xlu0 %v53_v3  ;;  %v58_v7 = vsub.f32 1.0, %v57_v6 }
  0x18   :  { %v59_v8 = vmul.f32 %v142_v5, %v58_v7 }
  0x1a   :  { %v60_v9 = vadd.f32 %v142_v5, %v59_v8 }
  0x1c   :  { %v62_v10 = vsel %vm61_vm1, %v142_v5, %v60_v9 }
  0x81   :  { %v52_v11 = vpop.xlane.xlu0 %51 }
  0x82   :  { %v63_v12 = vmul.f32 %v62_v10, %v52_v11 }
  0x84   :  { %v65_v13 = vsub.f32 %v45_v0, %v63_v12 }
  0x86   :  { %v67_v14 = vmul.f32 %v65_v13, %v65_v13 }
  0x88   :  { %v69_v15 = vsel %vm49_vm0, %v67_v14, 0.0 }
  0x89   :  { %70 = vadd.xlane.f32.xlu1 %v69_v15  ;;  %v55_v16 = vpop.xlane.xlu0 %54 }
  0x8a   :  { %v64_v17 = vmul.f32 %v62_v10, %v55_v16 }
  0x8c   :  { %v66_v18 = vsub.f32 %v46_v2, %v64_v17 }
  0x8e   :  { %v68_v19 = vmul.f32 %v66_v18, %v66_v18 }
  0x90   :  { %v72_v20 = vsel %vm49_vm0, %v68_v19, 0.0 }
  0x91   :  { %73 = vadd.xlane.f32.xlu1 %v72_v20 }
  0xfc   :  { %v71_v21 = vpop.xlane.xlu1 %70 }
  0xfd   :  { %v75_v22 = vmul.f32 %v71_v21, %v62_v10 }
  0xff   :  { %v77_v23 = vadd.f32 1e-12, %v75_v22 }
 0x101   :  { %143 = vrsqrt.f32 %v77_v23  ;;  %vm85_vm3 = vweird.f32 %v77_v23 }
 0x104   :  { %v74_v24 = vpop.xlane.xlu1 %73 }
 0x105   :  { %v76_v25 = vmul.f32 %v74_v24, %v62_v10 }
 0x107   :  { %v144_v26 = vpop.eup %143  ;;  %v78_v27 = vadd.f32 1e-12, %v76_v25 }
 0x108   :  { %v80_v28 = vmul.f32 %v144_v26, %v77_v23  ;;  %vm86_vm2 = vweird.f32 %v144_v26 }
 0x109   :  { %145 = vrsqrt.f32 %v78_v27  ;;  %vm87_vm4 = vmor %vm85_vm3, %vm86_vm2  ;;  %vm95_vm6 = vweird.f32 %v78_v27 }
 0x10a   :  { %v81_v29 = vmul.f32 %v144_v26, %v80_v28 }
 0x10c   :  { %v82_v30 = vmul.f32 0.5, %v81_v29 }
 0x10e   :  { %v83_v31 = vsub.f32 1.5, %v82_v30 }
 0x10f   :  { %v146_v32 = vpop.eup %145 }
 0x110   :  { %v84_v33 = vmul.f32 %v144_v26, %v83_v31  ;;  %v90_v34 = vmul.f32 %v146_v32, %v78_v27  ;;  %vm96_vm5 = vweird.f32 %v146_v32 }
 0x111   :  { %vm97_vm7 = vmor %vm95_vm6, %vm96_vm5 }
 0x112   :  { %v88_v36 = vsel %vm87_vm4, %v144_v26, %v84_v33  ;;  %v91_v37 = vmul.f32 %v146_v32, %v90_v34 }
 0x113   :  { %v99_v38 = vmul.f32 %v88_v36, %v65_v13 }
 0x114   :  { %v92_v40 = vmul.f32 0.5, %v91_v37 }
 0x115   :  { %v104_v41 = vmul.f32 %v139_v35, %v99_v38 }
 0x116   :  { %v93_v42 = vsub.f32 1.5, %v92_v40 }
 0x117   :  { %v109_v43 = vadd.f32 %v140_v39, %v104_v41 }
 0x118   :  { %v94_v44 = vmul.f32 %v146_v32, %v93_v42 }
 0x119   :  { %111 = vst.msk [vmem:[#allocation7] sm:$0xff] %vm49_vm0, %v109_v43 }
 0x11a   :  { %v98_v45 = vsel %vm97_vm7, %v146_v32, %v94_v44 }
 0x11b   :  { %v100_v46 = vmul.f32 %v98_v45, %v66_v18 }
 0x11d   :  { %v105_v47 = vmul.f32 %v139_v35, %v100_v46 }
 0x11f   :  { %v110_v48 = vadd.f32 %v140_v39, %v105_v47 }
 0x121   :  { %112 = vst.msk [vmem:[#allocation7 + $0x8] sm:$0xff] %vm49_vm0, %v110_v48 }
 0x122   :  { %125 = dma.vmem_to_hbm [thread:$0]  %s118_s25, 256, %s120_s28, [#allocation4], %s226_s20, %s226_s20, %s227_s21  }
 0x123   :  { %223 = dma.done.wait [#allocation4], 256  }
 0x124   :  { %224 = vsyncadd [#allocation4], 4294967040 }
 0x125   :  { %130 = vsyncpa [#allocation3], 1 }
 0x126   :  { %131 = vsyncpa [#allocation6], 1 }
 0x127   :  { %132 = vsyncpa [#allocation4], 1 }

</bundles_post_ra>
